<compile_context>
chip_gen: v5e
topology: v5e:2x2
jax: 0.10.0
libtpu: 0.0.40
codegen_flags: <defaults>
</compile_context>

<pallas_src>
import functools

import jax
import jax.numpy as jnp
from jax import lax
from jax.experimental import pallas as pl
from jax.experimental.pallas import tpu as pltpu


GROUPS = 16


# ----------------------------- Pallas kernel -------------------------------- #

def grouped_conv1d_kernel(x_ref, w_ref, b_ref, out_ref, *, k_taps, halo):
    # x_ref:   [tb, L_pad, C_in]        channels-last (lanes = C_in), full L resident
    # w_ref:   [K*C_in, C_out]          tap-fused dense weights (block-diag over groups)
    # b_ref:   [1, C_out]
    # out_ref: [tb, tl, C_out]          lane-dense (C_out = 256)
    tb, tl, c_out = out_ref.shape
    c_in = x_ref.shape[-1]

    j = pl.program_id(1)                                  # L_out tile index
    start = pl.multiple_of(j * tl, 8)                     # tl is a multiple of 8

    # Halo'd input window for this output tile (8-aligned dynamic sublane slice).
    x_win = x_ref[:, pl.ds(start, tl + halo), :]          # (tb, tl+halo, C_in)

    # im2col: lane-concat the K shifted tap slices -> one 192-deep contraction.
    taps = [x_win[:, k:k + tl, :] for k in range(k_taps)] # K x (tb, tl, C_in)
    p = jnp.concatenate(taps, axis=-1)                    # (tb, tl, K*C_in)
    p = p.reshape(tb * tl, k_taps * c_in)                 # (rows, 192)

    acc = jnp.dot(p, w_ref[...],
                  preferred_element_type=jnp.float32)     # (rows, C_out), one MXU slab
    acc = acc + b_ref[...]                                # bias added once per tile
    out_ref[...] = acc.reshape(tb, tl, c_out).astype(out_ref.dtype)


# ------------------------------- host glue ----------------------------------- #

def _round_up(x, m):
    return ((x + m - 1) // m) * m


def _dense_tap_weights(w, groups):
    """[C_out, C_in/groups, K] grouped weights -> [K, C_in, C_out] block-diagonal."""
    C_out, Cin_g, K = w.shape
    C_in = Cin_g * groups
    out_g = C_out // groups
    w_full = jnp.zeros((K, C_in, C_out), jnp.float32)
    for g in range(groups):
        blk = jnp.transpose(w[g * out_g:(g + 1) * out_g], (2, 1, 0))  # [K, Cin_g, out_g]
        w_full = w_full.at[:, g * Cin_g:(g + 1) * Cin_g,
                           g * out_g:(g + 1) * out_g].set(blk)
    return w_full


def _device_profile():
    """(num_tensorcores, vmem_limit_bytes, per-step in+out byte budget) by generation."""
    try:
        kind = jax.devices()[0].device_kind.lower()
    except Exception:
        kind = ""
    is_v7 = "v7" in kind
    num_cores = 2 if is_v7 else 1                         # v5e/v6e: 1 TC, v7x: 2
    vmem_limit = (48 if is_v7 else 80) * 1024 * 1024      # v7x: 64 MiB physical VMEM
    step_budget = (6 if is_v7 else 12) * 1024 * 1024
    return num_cores, vmem_limit, step_budget


def _choose_tiles(B, L_out, C_in, C_out, K, itemsize, num_cores, step_budget):
    halo = _round_up(max(K - 1, 1), 8)
    tl = min(512, _round_up(L_out, 8))                    # L_out tile (sublanes, %8)
    nj = -(-L_out // tl)
    L_pad = nj * tl + halo
    in_row = L_pad * C_in * itemsize                      # input bytes per batch row
    out_row = tl * C_out * 4                              # f32 output bytes per row/tile
    tb = max(1, step_budget // (in_row + out_row))
    if num_cores >= 2 and B >= 2:
        tb = min(tb, max(1, B // 2))                      # feed both v7x TensorCores
    tb = min(tb, B)
    return tb, tl, nj, L_pad, halo


def temporal_parallel_encoder_forward(x, w, b, *, groups=GROUPS,
                                      compute_dtype=jnp.float32):
    """x: [B, C_in, L], w: [C_out, C_in/groups, K], b: [C_out] -> [B, C_out, L-K+1]."""
    B, C_in, L = x.shape
    C_out, Cin_g, K = w.shape
    assert C_in == Cin_g * groups and C_out % groups == 0
    assert L >= K, "sequence shorter than kernel"
    L_out = L - K + 1

    num_cores, vmem_limit, step_budget = _device_profile()
    itemsize = jnp.dtype(compute_dtype).itemsize
    tb, tl, nj, L_pad, halo = _choose_tiles(B, L_out, C_in, C_out, K,
                                            itemsize, num_cores, step_budget)
    B_pad = _round_up(B, tb)
    L_out_pad = nj * tl

    x_t = jnp.transpose(x, (0, 2, 1)).astype(compute_dtype)        # [B, L, C_in]
    x_t = jnp.pad(x_t, ((0, B_pad - B), (0, L_pad - L), (0, 0)))
    w_flat = _dense_tap_weights(w.astype(jnp.float32), groups)     # [K, C_in, C_out]
    w_flat = w_flat.reshape(K * C_in, C_out).astype(compute_dtype) # [192, 256]
    b_row = b.astype(jnp.float32).reshape(1, C_out)

    kernel = functools.partial(grouped_conv1d_kernel, k_taps=K, halo=halo)
    out = pl.pallas_call(
        kernel,
        out_shape=jax.ShapeDtypeStruct((B_pad, L_out_pad, C_out), jnp.float32),
        grid_spec=pltpu.PrefetchScalarGridSpec(
            num_scalar_prefetch=0,
            grid=(B_pad // tb, nj),                       # L_out tiles innermost
            in_specs=[
                pl.BlockSpec((tb, L_pad, C_in), lambda i, j: (i, 0, 0)),
                pl.BlockSpec((K * C_in, C_out), lambda i, j: (0, 0)),
                pl.BlockSpec((1, C_out), lambda i, j: (0, 0)),
            ],
            out_specs=pl.BlockSpec((tb, tl, C_out), lambda i, j: (i, j, 0)),
        ),
        compiler_params=pltpu.CompilerParams(
            dimension_semantics=("parallel", "arbitrary"),
            vmem_limit_bytes=vmem_limit,
        ),
    )(x_t, w_flat, b_row)

    out = out[:B, :L_out, :]                              # [B, L_out, C_out]
    # TODO(synk): emit [B, C_out, L_out] directly from the kernel (XLU transpose of
    # the [tl, 256] tile) to avoid this extra HBM pass over the output.
    return jnp.transpose(out, (0, 2, 1))                  # [B, C_out, L_out]


# ------------------------------- reference ----------------------------------- #

def temporal_parallel_encoder_reference(x, w, b, *, groups=GROUPS):
    """Pure-JAX reference replicating nn.Conv1d(64, 256, 3, groups=16)."""
    y = lax.conv_general_dilated(
        x, w, window_strides=(1,), padding="VALID",
        dimension_numbers=("NCH", "OIH", "NCH"),
        feature_group_count=groups,
        precision=lax.Precision.HIGHEST)
    return y + b.reshape(1, -1, 1)


# --------------------------------- main --------------------------------------- #

if __name__ == "__main__":
    B, C_IN, L = 2, 64, 16
    C_OUT, K = 256, 3

    key = jax.random.PRNGKey(0)
    k1, k2, k3 = jax.random.split(key, 3)
    # parameters shaped per nn.Conv1d(64, 256, kernel_size=3, groups=16)
    w = jax.random.normal(k1, (C_OUT, C_IN // GROUPS, K), jnp.float32) * 0.1
    b = jax.random.normal(k2, (C_OUT,), jnp.float32) * 0.1
    x = jax.random.normal(k3, (B, C_IN, L), jnp.float32)

    out = temporal_parallel_encoder_forward(x, w, b)
    out = jax.block_until_ready(out)

    ref = jax.block_until_ready(temporal_parallel_encoder_reference(x, w, b))
    assert out.shape == (B, C_OUT, L - K + 1), out.shape
    assert jnp.allclose(out, ref, atol=2e-4, rtol=2e-4), float(jnp.max(jnp.abs(out - ref)))

    print("KERNEL_OK")
</pallas_src>

<mosaic_0001>
module attributes {stable_mosaic.version = 11 : i64} {
  func.func @grouped_conv1d_kernel(%arg0: i32, %arg1: i32, %arg2: memref<2x24x64xf32, #tpu.memory_space<vmem>>, %arg3: memref<192x256xf32, #tpu.memory_space<vmem>>, %arg4: memref<1x256xf32, #tpu.memory_space<vmem>>, %arg5: memref<2x16x256xf32, #tpu.memory_space<vmem>>) attributes {dimension_semantics = [#tpu.dimension_semantics<parallel>, #tpu.dimension_semantics<arbitrary>], iteration_bounds = array<i64: 1, 1>, scalar_prefetch = 0 : i64, scratch_operands = 0 : i64, tpu.core_type = #tpu.core_type<tc>, window_params = [{transform_indices = @transform_0, window_bounds = array<i64: 2, 24, 64>}, {pipeline_mode = #tpu.pipeline_mode<synchronous>, transform_indices = @transform_1, window_bounds = array<i64: 192, 256>}, {pipeline_mode = #tpu.pipeline_mode<synchronous>, transform_indices = @transform_2, window_bounds = array<i64: 1, 256>}, {transform_indices = @transform_3, window_bounds = array<i64: 2, 16, 256>}]} {
    %c16_i32 = arith.constant 16 : i32
    %0 = arith.muli %arg1, %c16_i32 : i32
    %1 = tpu.assume_multiple %0, 8 : i32
    %c0 = arith.constant 0 : index
    %2 = arith.index_cast %1 : i32 to index
    %c0_0 = arith.constant 0 : index
    %3 = vector.load %arg2[%c0, %2, %c0_0] : memref<2x24x64xf32, #tpu.memory_space<vmem>>, vector<2x24x64xf32>
    %4 = vector.extract_strided_slice %3 {offsets = [0, 0, 0], sizes = [2, 16, 64], strides = [1, 1, 1]} : vector<2x24x64xf32> to vector<2x16x64xf32>
    %5 = vector.extract_strided_slice %3 {offsets = [0, 1, 0], sizes = [2, 16, 64], strides = [1, 1, 1]} : vector<2x24x64xf32> to vector<2x16x64xf32>
    %6 = vector.extract_strided_slice %3 {offsets = [0, 2, 0], sizes = [2, 16, 64], strides = [1, 1, 1]} : vector<2x24x64xf32> to vector<2x16x64xf32>
    %7 = tpu.concatenate %4, %5, %6 in 2 : vector<2x16x64xf32>, vector<2x16x64xf32>, vector<2x16x64xf32> -> vector<2x16x192xf32>
    %8 = vector.shape_cast %7 : vector<2x16x192xf32> to vector<32x192xf32>
    %c0_1 = arith.constant 0 : index
    %c0_2 = arith.constant 0 : index
    %9 = vector.load %arg3[%c0_1, %c0_2] : memref<192x256xf32, #tpu.memory_space<vmem>>, vector<192x256xf32>
    %cst = arith.constant dense<0.000000e+00> : vector<32x256xf32>
    %10 = tpu.matmul %8, %9, %cst {dimension_numbers = #tpu.dot_dimension_numbers<[1], [0], [0], [1], [0, 0, 1, 1], [], []>} : vector<32x192xf32>, vector<192x256xf32>, vector<32x256xf32> -> vector<32x256xf32>
    %c0_3 = arith.constant 0 : index
    %c0_4 = arith.constant 0 : index
    %11 = vector.load %arg4[%c0_3, %c0_4] : memref<1x256xf32, #tpu.memory_space<vmem>>, vector<1x256xf32>
    %12 = vector.broadcast %11 : vector<1x256xf32> to vector<32x256xf32>
    %13 = arith.addf %10, %12 : vector<32x256xf32>
    %14 = vector.shape_cast %13 : vector<32x256xf32> to vector<2x16x256xf32>
    %c0_5 = arith.constant 0 : index
    %c0_6 = arith.constant 0 : index
    %c0_7 = arith.constant 0 : index
    %15 = vector.load %arg5[%c0_5, %c0_6, %c0_7] : memref<2x16x256xf32, #tpu.memory_space<vmem>>, vector<2x16x256xf32>
    tpu.vector_store %arg5[%c0_5, %c0_6, %c0_7], %14 {strides = array<i32>} : memref<2x16x256xf32, #tpu.memory_space<vmem>>, vector<2x16x256xf32>,
    return
  }
  func.func @transform_0(%arg0: i32, %arg1: i32) -> (i32, i32, i32) {
    %c0_i32 = arith.constant 0 : i32
    %c0_i32_0 = arith.constant 0 : i32
    %c0_i32_1 = arith.constant 0 : i32
    return %arg0, %c0_i32, %c0_i32_0 : i32, i32, i32
  }
  func.func @transform_1(%arg0: i32, %arg1: i32) -> (i32, i32) {
    %c0_i32 = arith.constant 0 : i32
    %c0_i32_0 = arith.constant 0 : i32
    %c0_i32_1 = arith.constant 0 : i32
    return %c0_i32, %c0_i32_0 : i32, i32
  }
  func.func @transform_2(%arg0: i32, %arg1: i32) -> (i32, i32) {
    %c0_i32 = arith.constant 0 : i32
    %c0_i32_0 = arith.constant 0 : i32
    %c0_i32_1 = arith.constant 0 : i32
    return %c0_i32, %c0_i32_0 : i32, i32
  }
  func.func @transform_3(%arg0: i32, %arg1: i32) -> (i32, i32, i32) {
    %c0_i32 = arith.constant 0 : i32
    %c0_i32_0 = arith.constant 0 : i32
    return %arg0, %arg1, %c0_i32 : i32, i32, i32
  }
}

</mosaic_0001>

<bundles_post_ra>
// kernel: tpu_custom_call.1
= control target key start
LH: loop header
LB: loop body
LE: loop exit
PB: predicated region body
PF: predicated region fallthrough
CT: control target
= control target key end

     0   :  { %8 = vsyncpa [#allocation3], 0  ;;  %s537_s0 = inlined_call_operand.hbm [shape: f32[2,24,64], index: 0, kind: input, shape index: {}]   ;;  %s538_s1 = inlined_call_operand.hbm [shape: f32[192,256], index: 1, kind: input, shape index: {}]   ;;  %s539_s2 = inlined_call_operand.hbm [shape: f32[1,256], index: 2, kind: input, shape index: {}]   ;;  %s540_s3 = inlined_call_operand.hbm [shape: f32[2,16,256], index: 3, kind: output, shape index: {}]  }
   0x1   :  { %9 = vsyncpa [#allocation6], 0  ;;  %s28_s14 = sshll.u32 %s538_s1, 4  ;;  %s29_s14 = int_to_ptr.hbm [resolvable:$true] %s28_s14 }
   0x2   :  { %10 = vsyncpa [#allocation4], 0  ;;  %s438_s15 = smov [#allocation5]   ;;  %s15_s19 = sshll.u32 %s537_s0, 4  ;;  %s16_s19 = int_to_ptr.hbm [resolvable:$true] %s15_s19 }
   0x3   :  { %s30_s16 = sshll.u32 %s438_s15, 4  ;;  %s439_s20 = smov 256   ;;  %s31_s16 = int_to_ptr.vmem [resolvable:$true] %s30_s16 }
   0x4   :  { %s440_s21 = smov 16   ;;  %s441_s22 = smov [#allocation2]  }
   0x5   :  { %36 = dma.hbm_to_vmem [thread:$0]  %s29_s14, 6144, %s31_s16, [#allocation6], %s439_s20, %s439_s20, %s440_s21  }
   0x6   :  { %s17_s23 = sshll.u32 %s441_s22, 4  ;;  %s442_s1 = smov 128   ;;  %s18_s23 = int_to_ptr.vmem [resolvable:$true] %s17_s23 }
   0x7   :  { %s443_s24 = smov 8   ;;  %s42_s27 = sshll.u32 %s539_s2, 4  ;;  %s43_s27 = int_to_ptr.hbm [resolvable:$true] %s42_s27 }
   0x8   :  { %23 = dma.hbm_to_vmem [thread:$0]  %s16_s19, 768, %s18_s23, [#allocation3], %s442_s1, %s442_s1, %s443_s24  }
   0x9   :  { %s444_s28 = smov [#allocation7]  }
   0xa   :  { %s44_s0 = sshll.u32 %s444_s28, 4  ;;  %s45_s0 = int_to_ptr.vmem [resolvable:$true] %s44_s0 }
   0xb   :  { %47 = dma.hbm_to_vmem [thread:$0]  %s43_s27, 32, %s45_s0, [#allocation6]  }
   0xc   :  { %432 = dma.done.wait [#allocation3], 768  }
   0xd   :  { %433 = vsyncadd [#allocation3], 4294966528 }
   0xe   :  { %434 = dma.done.wait [#allocation6], 6176  }
   0xf   :  { %435 = vsyncadd [#allocation6], 4294961120  ;;  %v479_v0 = vld [vmem:[#allocation2] sm:$0xff]  ;;  %v481_v1 = vld [vmem:[#allocation2 + $0x8] sm:$0xff]  ;;  %vm74_vm0 = vcmask 1046528   ;;  %s445_s2 = smov 64  }
  0x10   :  { %v75_v2 = vrot.slane %v479_v0, 1  ;;  %v76_v3 = vrot.slane %v481_v1, 1  ;;  %v485_v4 = vld [vmem:[#allocation2 + $0x10] sm:$0xff]  ;;  %v487_v5 = vld [vmem:[#allocation2 + $0x18] sm:$0xff]  ;;  %v489_v6 = vld [vmem:[#allocation2 + $0x20] sm:$0xff]  ;;  %v98_v62 = vrot.slane %v479_v0, 2 }
  0x11   :  { %v80_v7 = vrot.slane %v487_v5, 1  ;;  %v81_v8 = vrot.slane %v489_v6, 1  ;;  %v143_v9 = vld [vmem:[#allocation5 + $0xf0] sm:$0xff]  ;;  %v144_v10 = vld [vmem:[#allocation5 + $0xf8] sm:$0xff]  ;;  %v141_v11 = vld [vmem:[#allocation5 + $0xe0] sm:$0xff]  ;;  %v78_v17 = vrot.slane %v485_v4, 1 }
  0x12   :  { %v77_v12 = vsel %vm74_vm0, %v75_v2, %v76_v3  ;;  %v494_v13 = vld [vmem:[#allocation2 + $0x28] sm:$0xff]  ;;  %175 = vmatpush.msra.mxu0 %v143_v9  ;;  %233 = vmatpush.msra.mxu2 %v144_v10  ;;  %v142_v14 = vld [vmem:[#allocation5 + $0xe8] sm:$0xff]  ;;  %v139_v16 = vld [vmem:[#allocation5 + $0xd0] sm:$0xff]  ;;  %v99_v63 = vrot.slane %v481_v1, 2  ;;  %vm97_vm1 = vcmask 1045504   ;;  %vm108_vm2 = vcmask 523264  }
  0x13   :  { %85 = vrot.lane.b32.xlu0 %v77_v12, %s445_s2  ;;  %v82_v15 = vsel %vm74_vm0, %v80_v7, %v81_v8  ;;  %v140_v18 = vld [vmem:[#allocation5 + $0xd8] sm:$0xff]  ;;  %v83_v19 = vrot.slane %v494_v13, 1  ;;  %v137_v20 = vld [vmem:[#allocation5 + $0xc0] sm:$0xff]  ;;  %v138_v21 = vld [vmem:[#allocation5 + $0xc8] sm:$0xff]  ;;  %v79_v24 = vsel %vm74_vm0, %v76_v3, %v78_v17  ;;  %v103_v10 = vrot.slane %v487_v5, 2  ;;  %s446_s29 = smov [#allocation8]  }
  0x14   :  { %89 = vrot.lane.b32.xlu1 %v82_v15, %s445_s2  ;;  %176 = vmatpush.msra.mxu0 %v141_v11  ;;  %v135_v22 = vld [vmem:[#allocation5 + $0xb0] sm:$0xff]  ;;  %v136_v25 = vld [vmem:[#allocation5 + $0xb8] sm:$0xff]  ;;  %v157_v27 = vld [vmem:[#allocation5 + $0x160] sm:$0xff]  ;;  %v100_v7 = vsel %vm97_vm1, %v98_v62, %v99_v63  ;;  %v104_v11 = vrot.slane %v489_v6, 2  ;;  %s303_s30 = sshll.u32 %s446_s29, 4  ;;  %s305_s6 = sshll.u32 %s540_s3, 4  ;;  %s304_s30 = int_to_ptr.vmem [resolvable:$true] %s303_s30  ;;  %s306_s6 = int_to_ptr.hbm [resolvable:$true] %s305_s6 }
  0x15   :  { %234 = vmatpush.msra.mxu2 %v142_v14  ;;  %v159_v23 = vld [vmem:[#allocation5 + $0x170] sm:$0xff]  ;;  %v160_v26 = vld [vmem:[#allocation5 + $0x178] sm:$0xff]  ;;  %v84_v28 = vsel %vm74_vm0, %v81_v8, %v83_v19  ;;  %v133_v29 = vld [vmem:[#allocation5 + $0xa0] sm:$0xff]  ;;  %v101_v8 = vrot.slane %v485_v4, 2  ;;  %v106_v14 = vrot.slane %v494_v13, 2 }
  0x16   :  { %177 = vmatpush.msra.mxu0 %v139_v16  ;;  %212 = vmatpush.msra.mxu1 %v159_v23  ;;  %v134_v30 = vld [vmem:[#allocation5 + $0xa8] sm:$0xff]  ;;  %v131_v32 = vld [vmem:[#allocation5 + $0x90] sm:$0xff]  ;;  %v132_v34 = vld [vmem:[#allocation5 + $0x98] sm:$0xff]  ;;  %v105_v12 = vsel %vm97_vm1, %v103_v10, %v104_v11 }
  0x17   :  { %235 = vmatpush.msra.mxu2 %v140_v18  ;;  %270 = vmatpush.msra.mxu3 %v160_v26  ;;  %v158_v31 = vld [vmem:[#allocation5 + $0x168] sm:$0xff]  ;;  %v155_v33 = vld [vmem:[#allocation5 + $0x150] sm:$0xff]  ;;  %v156_v35 = vld [vmem:[#allocation5 + $0x158] sm:$0xff]  ;;  %v102_v9 = vsel %vm97_vm1, %v99_v63, %v101_v8  ;;  %v107_v4 = vsel %vm97_vm1, %v104_v11, %v106_v14 }
  0x18   :  { %178 = vmatpush.msra.mxu0 %v137_v20  ;;  %213 = vmatpush.msra.mxu1 %v157_v27  ;;  %v129_v36 = vld [vmem:[#allocation5 + $0x80] sm:$0xff]  ;;  %v130_v38 = vld [vmem:[#allocation5 + $0x88] sm:$0xff]  ;;  %v127_v40 = vld [vmem:[#allocation5 + $0x70] sm:$0xff] }
  0x19   :  { %236 = vmatpush.msra.mxu2 %v138_v21  ;;  %271 = vmatpush.msra.mxu3 %v158_v31  ;;  %v153_v37 = vld [vmem:[#allocation5 + $0x140] sm:$0xff]  ;;  %v154_v39 = vld [vmem:[#allocation5 + $0x148] sm:$0xff]  ;;  %v151_v41 = vld [vmem:[#allocation5 + $0x130] sm:$0xff] }
  0x1a   :  { %179 = vmatpush.msra.mxu0 %v135_v22  ;;  %214 = vmatpush.msra.mxu1 %v155_v33  ;;  %v128_v42 = vld [vmem:[#allocation5 + $0x78] sm:$0xff]  ;;  %v125_v44 = vld [vmem:[#allocation5 + $0x60] sm:$0xff]  ;;  %v126_v46 = vld [vmem:[#allocation5 + $0x68] sm:$0xff] }
  0x1b   :  { %87 = vrot.lane.b32.xlu0 %v79_v24, %s445_s2  ;;  %237 = vmatpush.msra.mxu2 %v136_v25  ;;  %v152_v43 = vld [vmem:[#allocation5 + $0x138] sm:$0xff]  ;;  %v149_v45 = vld [vmem:[#allocation5 + $0x120] sm:$0xff]  ;;  %v150_v47 = vld [vmem:[#allocation5 + $0x128] sm:$0xff] }
  0x1c   :  { %91 = vrot.lane.b32.xlu1 %v84_v28, %s445_s2  ;;  %180 = vmatpush.msra.mxu0 %v133_v29  ;;  %v123_v48 = vld [vmem:[#allocation5 + $0x50] sm:$0xff]  ;;  %v124_v49 = vld [vmem:[#allocation5 + $0x58] sm:$0xff]  ;;  %v121_v50 = vld [vmem:[#allocation5 + $0x40] sm:$0xff] }
  0x1d   :  { %238 = vmatpush.msra.mxu2 %v134_v30  ;;  %272 = vmatpush.msra.mxu3 %v156_v35  ;;  %v122_v51 = vld [vmem:[#allocation5 + $0x48] sm:$0xff]  ;;  %v119_v52 = vld [vmem:[#allocation5 + $0x30] sm:$0xff]  ;;  %v120_v53 = vld [vmem:[#allocation5 + $0x38] sm:$0xff] }
  0x1e   :  { %181 = vmatpush.msra.mxu0 %v131_v32  ;;  %215 = vmatpush.msra.mxu1 %v153_v37  ;;  %v117_v54 = vld [vmem:[#allocation5 + $0x20] sm:$0xff]  ;;  %v118_v55 = vld [vmem:[#allocation5 + $0x28] sm:$0xff]  ;;  %v115_v56 = vld [vmem:[#allocation5 + $0x10] sm:$0xff] }
  0x1f   :  { %239 = vmatpush.msra.mxu2 %v132_v34  ;;  %273 = vmatpush.msra.mxu3 %v154_v39  ;;  %v116_v57 = vld [vmem:[#allocation5 + $0x18] sm:$0xff]  ;;  %v113_v58 = vld [vmem:[#allocation5] sm:$0xff]  ;;  %v147_v59 = vld [vmem:[#allocation5 + $0x110] sm:$0xff] }
  0x20   :  { %182 = vmatpush.msra.mxu0 %v129_v36  ;;  %216 = vmatpush.msra.mxu1 %v151_v41  ;;  %v114_v60 = vld [vmem:[#allocation5 + $0x8] sm:$0xff]  ;;  %v148_v61 = vld [vmem:[#allocation5 + $0x118] sm:$0xff]  ;;  %v145_v2 = vld [vmem:[#allocation5 + $0x100] sm:$0xff] }
  0x21   :  { %240 = vmatpush.msra.mxu2 %v130_v38  ;;  %274 = vmatpush.msra.mxu3 %v152_v43  ;;  %v146_v3 = vld [vmem:[#allocation5 + $0x108] sm:$0xff] }
  0x22   :  { %183 = vmatpush.msra.mxu0 %v127_v40  ;;  %217 = vmatpush.msra.mxu1 %v149_v45 }
  0x23   :  { %241 = vmatpush.msra.mxu2 %v128_v42  ;;  %275 = vmatpush.msra.mxu3 %v150_v47 }
  0x24   :  { %184 = vmatpush.msra.mxu0 %v125_v44  ;;  %218 = vmatpush.msra.mxu1 %v147_v59 }
  0x25   :  { %242 = vmatpush.msra.mxu2 %v126_v46  ;;  %276 = vmatpush.msra.mxu3 %v148_v61 }
  0x26   :  { %185 = vmatpush.msra.mxu0 %v123_v48  ;;  %219 = vmatpush.msra.mxu1 %v145_v2 }
  0x27   :  { %243 = vmatpush.msra.mxu2 %v124_v49  ;;  %277 = vmatpush.msra.mxu3 %v146_v3 }
  0x28   :  { %186 = vmatpush.msra.mxu0 %v121_v50  ;;  %319 = vmatmul.msk.f32.vlgmr.msra.gmra.mxu1 %vm108_vm2, %v100_v7 }
  0x29   :  { %244 = vmatpush.msra.mxu2 %v122_v51  ;;  %323 = vmatmul.msk.f32.vlgmr.msra.gmra.mxu3 %vm108_vm2, %v100_v7 }
  0x2a   :  { %187 = vmatpush.msra.mxu0 %v119_v52 }
  0x2b   :  { %245 = vmatpush.msra.mxu2 %v120_v53 }
  0x2c   :  { %188 = vmatpush.msra.mxu0 %v117_v54 }
  0x2d   :  { %246 = vmatpush.msra.mxu2 %v118_v55 }
  0x2e   :  { %189 = vmatpush.msra.mxu0 %v115_v56 }
  0x2f   :  { %247 = vmatpush.msra.mxu2 %v116_v57 }
  0x30   :  { %190 = vmatpush.msra.mxu0 %v113_v58  ;;  %320 = vmatmul.msk.f32.gmra.mxu1 %vm108_vm2, %v102_v9 }
  0x31   :  { %248 = vmatpush.msra.mxu2 %v114_v60  ;;  %324 = vmatmul.msk.f32.gmra.mxu3 %vm108_vm2, %v102_v9 }
  0x38   :  { %321 = vmatmul.msk.f32.gmra.mxu1 %vm108_vm2, %v105_v12 }
  0x39   :  { %325 = vmatmul.msk.f32.gmra.mxu3 %vm108_vm2, %v105_v12 }
  0x40   :  { %322 = vmatmul.msk.f32.gmra.mxu1 %vm108_vm2, %v107_v4 }
  0x41   :  { %326 = vmatmul.msk.f32.gmra.mxu3 %vm108_vm2, %v107_v4 }
  0x85   :  { %v86_v15 = vpop.permute.xlu0 %85 }
  0x86   :  { %v109_v16 = vsel %vm108_vm2, %v479_v0, %v86_v15  ;;  %v90_v19 = vpop.permute.xlu1 %89  ;;  %v161_v0 = vld [vmem:[#allocation7] sm:$0x3] }
  0x87   :  { %191 = vmatmul.f32.vlgmr.msra.gmra.mxu0 %v109_v16  ;;  %249 = vmatmul.f32.vlgmr.msra.gmra.mxu2 %v109_v16  ;;  %v111_v13 = vsel %vm108_vm2, %v487_v5, %v90_v19  ;;  %v163_v23 = vperm.slane %v161_v0, 0  ;;  %v164_v27 = vperm.slane %v161_v0, 1 }
  0x8d   :  { %v88_v17 = vpop.permute.xlu0 %87 }
  0x8e   :  { %v110_v18 = vsel %vm108_vm2, %v481_v1, %v88_v17  ;;  %v92_v20 = vpop.permute.xlu1 %91 }
  0x8f   :  { %194 = vmatmul.f32.gmra.mxu0 %v110_v18  ;;  %252 = vmatmul.f32.gmra.mxu2 %v110_v18  ;;  %v112_v21 = vsel %vm108_vm2, %v489_v6, %v92_v20 }
  0x97   :  { %197 = vmatmul.f32.gmra.mxu0 %v111_v13  ;;  %255 = vmatmul.f32.gmra.mxu2 %v111_v13 }
  0x9f   :  { %200 = vmatmul.f32.gmra.mxu0 %v112_v21  ;;  %258 = vmatmul.f32.gmra.mxu2 %v112_v21 }
  0xa5   :  { %v221_v22 = vpop.f32.mrf.mxu1 }
  0xac   :  { %v279_v25 = vpop.f32.mrf.mxu3 }
  0xad   :  { %v224_v28 = vpop.f32.mrf.mxu1 }
  0xb4   :  { %v282_v33 = vpop.f32.mrf.mxu3 }
  0xb5   :  { %v227_v35 = vpop.f32.mrf.mxu1 }
  0xbc   :  { %v285_v41 = vpop.f32.mrf.mxu3 }
  0xbd   :  { %v230_v45 = vpop.f32.mrf.mxu1 }
  0xc4   :  { %v288_v50 = vpop.f32.mrf.mxu3 }
 0x104   :  { %v192_v24 = vpop.f32.mrf.mxu0 }
 0x105   :  { %v193_v1 = vadd.f32 %v192_v24, %v163_v23 }
 0x107   :  { %v222_v26 = vadd.f32 %v221_v22, %v193_v1 }
 0x109   :  { %291 = vst [vmem:[#allocation8] sm:$0xff] %v222_v26 }
 0x10a   :  { %v250_v29 = vpop.f32.mrf.mxu2 }
 0x10b   :  { %v251_v5 = vadd.f32 %v250_v29, %v164_v27 }
 0x10c   :  { %v195_v30 = vpop.f32.mrf.mxu0 }
 0x10d   :  { %v196_v31 = vadd.f32 %v195_v30, %v163_v23  ;;  %v280_v32 = vadd.f32 %v279_v25, %v251_v5 }
 0x10f   :  { %292 = vst [vmem:[#allocation8 + $0x8] sm:$0xff] %v280_v32  ;;  %v225_v6 = vadd.f32 %v224_v28, %v196_v31 }
 0x111   :  { %293 = vst [vmem:[#allocation8 + $0x10] sm:$0xff] %v225_v6 }
 0x112   :  { %v253_v34 = vpop.f32.mrf.mxu2 }
 0x113   :  { %v254_v36 = vadd.f32 %v253_v34, %v164_v27 }
 0x114   :  { %v198_v37 = vpop.f32.mrf.mxu0 }
 0x115   :  { %v199_v38 = vadd.f32 %v198_v37, %v163_v23  ;;  %v283_v39 = vadd.f32 %v282_v33, %v254_v36 }
 0x117   :  { %294 = vst [vmem:[#allocation8 + $0x18] sm:$0xff] %v283_v39  ;;  %v228_v40 = vadd.f32 %v227_v35, %v199_v38 }
 0x119   :  { %295 = vst [vmem:[#allocation8 + $0x20] sm:$0xff] %v228_v40 }
 0x11a   :  { %v256_v42 = vpop.f32.mrf.mxu2 }
 0x11b   :  { %v257_v43 = vadd.f32 %v256_v42, %v164_v27 }
 0x11c   :  { %v201_v44 = vpop.f32.mrf.mxu0 }
 0x11d   :  { %v202_v46 = vadd.f32 %v201_v44, %v163_v23  ;;  %v286_v47 = vadd.f32 %v285_v41, %v257_v43 }
 0x11f   :  { %296 = vst [vmem:[#allocation8 + $0x28] sm:$0xff] %v286_v47  ;;  %v231_v48 = vadd.f32 %v230_v45, %v202_v46 }
 0x121   :  { %297 = vst [vmem:[#allocation8 + $0x30] sm:$0xff] %v231_v48 }
 0x122   :  { %v259_v49 = vpop.f32.mrf.mxu2 }
 0x123   :  { %v260_v51 = vadd.f32 %v259_v49, %v164_v27 }
 0x125   :  { %v289_v52 = vadd.f32 %v288_v50, %v260_v51 }
 0x127   :  { %298 = vst [vmem:[#allocation8 + $0x38] sm:$0xff] %v289_v52 }
 0x128   :  { %311 = dma.vmem_to_hbm [thread:$0]  %s304_s30, 1024, %s306_s6, [#allocation4], %s439_s20, %s439_s20, %s440_s21  }
 0x129   :  { %436 = dma.done.wait [#allocation4], 1024  }
 0x12a   :  { %437 = vsyncadd [#allocation4], 4294966272 }
 0x12b   :  { %316 = vsyncpa [#allocation3], 1 }
 0x12c   :  { %317 = vsyncpa [#allocation6], 1 }
 0x12d   :  { %318 = vsyncpa [#allocation4], 1 }

</bundles_post_ra>
